<compile_context>
chip_gen: v5e
topology: v5e:2x2
jax: 0.10.0
libtpu: 0.0.40
codegen_flags: <defaults>
</compile_context>

<pallas_src>
import jax
import jax.numpy as jnp
from jax.experimental import pallas as pl
from jax.experimental.pallas import tpu as pltpu


def _round_up(a, m):
    return (a + m - 1) // m * m


def _elu_f32(x):
    # ELU in f32.  exp(min(x,0))-1 matches expm1 to ~1.2e-7 abs error near 0-
    # (negligible here) and avoids inf on the untaken branch.
    return jnp.where(x > 0, x, jnp.exp(jnp.minimum(x, 0.0)) - 1.0)


def _news_classifier_kernel(x_ref, w1_ref, b1_ref, w2_ref, b2_ref,
                            wfc1_ref, bfc1_ref, wfc2_ref, bfc2_ref, pw_ref,
                            o_ref):
    # x_ref    : (TB, S_pad, E) zero-padded embedded tokens, channels-last;
    #            S_pad = L1p + 2 with L1p = 2*L2p (multiple of 16).
    # w1_ref   : (3, E, C) conv1 tap weights          b1_ref  (1, C)  f32
    # w2_ref   : (3, C, C) conv2 tap weights          b2_ref  (1, C)  f32
    # wfc1_ref : (C, H)                                bfc1_ref (1, H) f32
    # wfc2_ref : (H, 128) class-padded (zero cols)     bfc2_ref (1, 128) f32
    # pw_ref   : (L2p, 1) f32 avg-pool weights: 1/L2 for t < L2 else 0
    # o_ref    : (TB, 128) f32 log-probs (real classes live in [:, :K])
    TB, S_pad, E = x_ref.shape
    C = w2_ref.shape[2]
    L2p = (S_pad - 2) // 2                 # padded conv2 length (multiple of 8)
    M2 = TB * L2p
    cdt = w1_ref.dtype                     # MXU input dtype (bf16 by default)

    # ---- Conv1d(E->C, k=3, s=1) + ELU, evaluated directly at the positions
    # conv2 needs: even outputs (seg0) and odd outputs (seg1).  Each is the
    # sum of 3 tap matmuls fed by stride-2 sublane reads of the x block — no
    # im2row concat and no h1 scratch round-trip.
    def conv1_at(par):                     # par = 0 -> even rows, 1 -> odd rows
        acc = None
        for k in range(3):                 # static unrolled taps
            tap = x_ref[:, pl.ds(par + k, L2p, stride=2), :].reshape(M2, E)
            p = jnp.dot(tap, w1_ref[k], preferred_element_type=jnp.float32)
            acc = p if acc is None else acc + p
        return _elu_f32(acc + b1_ref[...])                    # (M2, C) f32

    seg0 = conv1_at(0)                     # conv1 rows 2t
    seg1 = conv1_at(1)                     # conv1 rows 2t+1
    # conv1 rows 2t+2 == seg0 shifted up by one row (lowered as a one-row
    # sublane shift: slice+concat / rotate).  The wrapped row only reaches
    # pool position t = L2p-1 >= L2, which pw zeroes (wrapper asserts L2<L2p).
    seg2 = jnp.roll(seg0, shift=-1, axis=0)

    # ---- Conv1d(C->C, k=3, s=2) + ELU: 3 accumulated tap matmuls ------------
    h2 = jnp.dot(seg0.astype(cdt), w2_ref[0], preferred_element_type=jnp.float32)
    h2 = h2 + jnp.dot(seg1.astype(cdt), w2_ref[1], preferred_element_type=jnp.float32)
    h2 = h2 + jnp.dot(seg2.astype(cdt), w2_ref[2], preferred_element_type=jnp.float32)
    h2 = _elu_f32(h2 + b2_ref[...])                           # (M2, C) f32

    # ---- avg_pool1d over the L2 valid positions via precomputed weights -----
    h2 = h2.reshape(TB, L2p, C)            # layout no-op (L2p % 8 == 0)
    feat = jnp.sum(h2 * pw_ref[...][None, :, :], axis=1)      # (TB, C) f32

    # dropout: identity (inference semantics)

    # ---- fc1 + ReLU ----------------------------------------------------------
    inter = jnp.dot(feat.astype(cdt), wfc1_ref[...],
                    preferred_element_type=jnp.float32) + bfc1_ref[...]
    inter = jnp.maximum(inter, 0.0)

    # ---- fc2 + LogSoftmax (classes padded to 128 lanes -> dense store) ------
    logits = jnp.dot(inter.astype(cdt), wfc2_ref[...],
                     preferred_element_type=jnp.float32) + bfc2_ref[...]
    m = jnp.max(logits, axis=-1, keepdims=True)   # -1e30 pad bias never wins
    z = logits - m
    logp = z - jnp.log(jnp.sum(jnp.exp(z), axis=-1, keepdims=True))
    o_ref[...] = logp                      # one unmasked (TB, 128) store


def _choose_batch_tile(B, S_pad, E, C, itemsize):
    """Batch tile TB (multiple of 8).

    Goals (perf review): TB as large as a conservative VMEM budget allows
    (amortize the ~0.35 us/step overhead and give the MXU a long M dim), but
    capped so the grid has >= 2 steps whenever B permits (v7x's two
    TensorCores can then split the 'parallel' batch axis).  The budget is set
    against the tightest limits across generations (v5e 16 MiB default scoped
    VMEM, v7x 64 MiB physical)."""
    L2p = (S_pad - 2) // 2
    per_sample = (2 * S_pad * E * itemsize      # double-buffered x block
                  + 2 * 128 * 4                 # double-buffered out block
                  + 6 * L2p * C * 4             # seg0/seg1/seg2/h2 f32 values
                  + 2 * L2p * E * itemsize)     # tap-read temporaries
    budget = 12 << 20
    tb = max(8, min(1024, budget // max(per_sample, 1)))
    tb = tb // 8 * 8
    b8 = _round_up(B, 8)
    if b8 >= 16:
        tb = min(tb, _round_up((b8 + 1) // 2, 8))   # guarantee >= 2 grid steps
    return max(8, min(tb, b8))


def news_classifier_forward(x_in, params, *, compute_dtype=jnp.bfloat16):
    """x_in: (B, S) int32 token ids -> (B, num_classes) f32 log-probs.

    compute_dtype is the activation/weight MXU & DMA format (bf16 by default,
    native rate on v5e/v6e/v7x); accumulation and elementwise math stay f32.
    """
    C = params["w1"].shape[0]
    E = params["w1"].shape[1]
    H = params["wfc1"].shape[0]
    K = params["wfc2"].shape[0]
    B, S = x_in.shape
    if S < 5:
        raise ValueError("max_seq_length must be >= 5 for k=3 conv + k=3,s=2 conv")

    L1 = S - 2                              # conv1: k=3, s=1, VALID
    L2 = (L1 - 3) // 2 + 1                  # conv2: k=3, s=2, VALID
    L1p = _round_up(L1, 16)                 # pad so L2p = L1p/2 is sublane-aligned
    L2p = L1p // 2
    S_pad = L1p + 2
    # The shifted seg2 row at pool position t = L2p-1 may hold wrapped data;
    # it must always be zero-weighted by the pooler:
    assert L2 < L2p, (L2, L2p)

    itemsize = jnp.dtype(compute_dtype).itemsize
    TB = _choose_batch_tile(B, S_pad, E, C, itemsize)
    Bp = _round_up(B, TB)                   # pad ragged batches instead of
    grid = (Bp // TB,)                      # collapsing the grid to one step

    # Embedding gather + zero-pad (plain-JAX glue; see TODO about fusing it).
    x_emb = jnp.take(params["embedding"].astype(compute_dtype), x_in, axis=0)
    x_pad = jnp.zeros((Bp, S_pad, E), compute_dtype).at[:B, :S, :].set(x_emb)

    # Weights pre-arranged for tap matmuls; biases stay f32.
    Kp = 128                                # lane-dense class padding
    w1f = jnp.transpose(params["w1"], (2, 1, 0)).astype(compute_dtype)   # (3,E,C)
    w2f = jnp.transpose(params["w2"], (2, 1, 0)).astype(compute_dtype)   # (3,C,C)
    wfc1t = params["wfc1"].T.astype(compute_dtype)                       # (C,H)
    wfc2t = jnp.zeros((H, Kp), compute_dtype).at[:, :K].set(
        params["wfc2"].T.astype(compute_dtype))                          # (H,128)
    b1 = params["b1"].reshape(1, C).astype(jnp.float32)
    b2 = params["b2"].reshape(1, C).astype(jnp.float32)
    bfc1 = params["bfc1"].reshape(1, H).astype(jnp.float32)
    bfc2 = jnp.full((1, Kp), -1e30, jnp.float32).at[0, :K].set(
        params["bfc2"].astype(jnp.float32))
    pw = jnp.where(jnp.arange(L2p) < L2, 1.0 / L2, 0.0).astype(
        jnp.float32).reshape(L2p, 1)

    def full(a):
        nd = a.ndim
        return pl.BlockSpec(a.shape, lambda i, _nd=nd: (0,) * _nd)

    out = pl.pallas_call(
        _news_classifier_kernel,
        out_shape=jax.ShapeDtypeStruct((Bp, Kp), jnp.float32),
        grid_spec=pltpu.PrefetchScalarGridSpec(
            num_scalar_prefetch=0,
            grid=grid,
            in_specs=[pl.BlockSpec((TB, S_pad, E), lambda i: (i, 0, 0)),
                      full(w1f), full(b1), full(w2f), full(b2),
                      full(wfc1t), full(bfc1), full(wfc2t), full(bfc2),
                      full(pw)],
            out_specs=pl.BlockSpec((TB, Kp), lambda i: (i, 0))),
        compiler_params=pltpu.CompilerParams(
            dimension_semantics=("parallel",),
            vmem_limit_bytes=32 * 1024 * 1024),
    )(x_pad, w1f, b1, w2f, b2, wfc1t, bfc1, wfc2t, bfc2, pw)
    return out[:B, :K]


def reference_forward(x_in, params):
    """Pure-JAX reference mirroring the PyTorch forward (eval-mode dropout)."""
    x_emb = jnp.take(params["embedding"], x_in, axis=0).astype(jnp.float32)
    x = jnp.transpose(x_emb, (0, 2, 1))                                   # NCL
    dn = ("NCH", "OIH", "NCH")
    h1 = jax.lax.conv_general_dilated(x, params["w1"], (1,), "VALID",
                                      dimension_numbers=dn)
    h1 = h1 + params["b1"][None, :, None]
    h1 = jnp.where(h1 > 0, h1, jnp.expm1(h1))
    h2 = jax.lax.conv_general_dilated(h1, params["w2"], (2,), "VALID",
                                      dimension_numbers=dn)
    h2 = h2 + params["b2"][None, :, None]
    h2 = jnp.where(h2 > 0, h2, jnp.expm1(h2))
    feat = jnp.mean(h2, axis=2)
    inter = jnp.maximum(feat @ params["wfc1"].T + params["bfc1"], 0.0)
    logits = inter @ params["wfc2"].T + params["bfc2"]
    return jax.nn.log_softmax(logits, axis=-1)


if __name__ == "__main__":
    key = jax.random.PRNGKey(0)
    vocab, E, C, H, K = 50, 32, 16, 32, 4   # emb_size, num_channels, hidden, classes
    ks = jax.random.split(key, 10)
    params = {
        "embedding": jax.random.normal(ks[0], (vocab, E), jnp.float32),
        "w1":   jax.random.normal(ks[1], (C, E, 3), jnp.float32) * 0.1,
        "b1":   jax.random.normal(ks[2], (C,), jnp.float32) * 0.1,
        "w2":   jax.random.normal(ks[3], (C, C, 3), jnp.float32) * 0.1,
        "b2":   jax.random.normal(ks[4], (C,), jnp.float32) * 0.1,
        "wfc1": jax.random.normal(ks[5], (H, C), jnp.float32) * 0.1,
        "bfc1": jax.random.normal(ks[6], (H,), jnp.float32) * 0.1,
        "wfc2": jax.random.normal(ks[7], (K, H), jnp.float32) * 0.1,
        "bfc2": jax.random.normal(ks[8], (K,), jnp.float32) * 0.1,
    }

    # --- test 1: small batch (single grid step), f32 strict + bf16 default ---
    B, S = 2, 16
    x_in = jax.random.randint(ks[9], (B, S), 0, vocab, dtype=jnp.int32)
    ref = reference_forward(x_in, params)

    out_f32 = news_classifier_forward(x_in, params, compute_dtype=jnp.float32)
    jax.block_until_ready(out_f32)
    assert out_f32.shape == (B, K), out_f32.shape
    assert jnp.allclose(out_f32, ref, atol=2e-3, rtol=2e-3), (out_f32, ref)

    out_bf16 = news_classifier_forward(x_in, params)        # bf16 default path
    jax.block_until_ready(out_bf16)
    assert out_bf16.shape == (B, K), out_bf16.shape
    assert jnp.allclose(out_bf16, ref, atol=5e-2, rtol=5e-2), (out_bf16, ref)

    # --- test 2: ragged batch + multi-step 'parallel' grid (batch padding) ---
    B2, S2 = 24, 21
    x_in2 = jax.random.randint(jax.random.PRNGKey(1), (B2, S2), 0, vocab,
                               dtype=jnp.int32)
    ref2 = reference_forward(x_in2, params)
    out2 = news_classifier_forward(x_in2, params, compute_dtype=jnp.float32)
    jax.block_until_ready(out2)
    assert out2.shape == (B2, K), out2.shape
    assert jnp.allclose(out2, ref2, atol=2e-3, rtol=2e-3), (out2, ref2)

    print("KERNEL_OK")
</pallas_src>

<mosaic_0001>
module attributes {stable_mosaic.version = 11 : i64} {
  func.func @_news_classifier_kernel(%arg0: i32, %arg1: memref<8x18x32xf32, #tpu.memory_space<vmem>>, %arg2: memref<3x32x16xf32, #tpu.memory_space<vmem>>, %arg3: memref<1x16xf32, #tpu.memory_space<vmem>>, %arg4: memref<3x16x16xf32, #tpu.memory_space<vmem>>, %arg5: memref<1x16xf32, #tpu.memory_space<vmem>>, %arg6: memref<16x32xf32, #tpu.memory_space<vmem>>, %arg7: memref<1x32xf32, #tpu.memory_space<vmem>>, %arg8: memref<32x128xf32, #tpu.memory_space<vmem>>, %arg9: memref<1x128xf32, #tpu.memory_space<vmem>>, %arg10: memref<8x1xf32, #tpu.memory_space<vmem>>, %arg11: memref<8x128xf32, #tpu.memory_space<vmem>>) attributes {dimension_semantics = [#tpu.dimension_semantics<parallel>], iteration_bounds = array<i64: 1>, scalar_prefetch = 0 : i64, scratch_operands = 0 : i64, tpu.core_type = #tpu.core_type<tc>, window_params = [{transform_indices = @transform_0, window_bounds = array<i64: 8, 18, 32>}, {pipeline_mode = #tpu.pipeline_mode<synchronous>, transform_indices = @transform_1, window_bounds = array<i64: 3, 32, 16>}, {pipeline_mode = #tpu.pipeline_mode<synchronous>, transform_indices = @transform_2, window_bounds = array<i64: 1, 16>}, {pipeline_mode = #tpu.pipeline_mode<synchronous>, transform_indices = @transform_3, window_bounds = array<i64: 3, 16, 16>}, {pipeline_mode = #tpu.pipeline_mode<synchronous>, transform_indices = @transform_4, window_bounds = array<i64: 1, 16>}, {pipeline_mode = #tpu.pipeline_mode<synchronous>, transform_indices = @transform_5, window_bounds = array<i64: 16, 32>}, {pipeline_mode = #tpu.pipeline_mode<synchronous>, transform_indices = @transform_6, window_bounds = array<i64: 1, 32>}, {pipeline_mode = #tpu.pipeline_mode<synchronous>, transform_indices = @transform_7, window_bounds = array<i64: 32, 128>}, {pipeline_mode = #tpu.pipeline_mode<synchronous>, transform_indices = @transform_8, window_bounds = array<i64: 1, 128>}, {pipeline_mode = #tpu.pipeline_mode<synchronous>, transform_indices = @transform_9, window_bounds = array<i64: 8, 1>}, {transform_indices = @transform_10, window_bounds = array<i64: 8, 128>}]} {
    %c0 = arith.constant 0 : index
    %c0_0 = arith.constant 0 : index
    %c0_1 = arith.constant 0 : index
    %0 = tpu.strided_load %arg1[%c0, %c0_0, %c0_1] {strides = array<i32: 1, 2, 1>} : memref<8x18x32xf32, #tpu.memory_space<vmem>>, vector<8x8x32xf32>
    %1 = vector.shape_cast %0 : vector<8x8x32xf32> to vector<64x32xf32>
    %c0_2 = arith.constant 0 : index
    %c0_3 = arith.constant 0 : index
    %c0_4 = arith.constant 0 : index
    %2 = vector.load %arg2[%c0_2, %c0_3, %c0_4] : memref<3x32x16xf32, #tpu.memory_space<vmem>>, vector<1x32x16xf32>
    %3 = vector.shape_cast %2 : vector<1x32x16xf32> to vector<32x16xf32>
    %cst = arith.constant dense<0.000000e+00> : vector<64x16xf32>
    %4 = tpu.matmul %1, %3, %cst {dimension_numbers = #tpu.dot_dimension_numbers<[1], [0], [0], [1], [0, 0, 1, 1], [], []>} : vector<64x32xf32>, vector<32x16xf32>, vector<64x16xf32> -> vector<64x16xf32>
    %c0_5 = arith.constant 0 : index
    %c1 = arith.constant 1 : index
    %c0_6 = arith.constant 0 : index
    %5 = tpu.strided_load %arg1[%c0_5, %c1, %c0_6] {strides = array<i32: 1, 2, 1>} : memref<8x18x32xf32, #tpu.memory_space<vmem>>, vector<8x8x32xf32>
    %6 = vector.shape_cast %5 : vector<8x8x32xf32> to vector<64x32xf32>
    %c1_7 = arith.constant 1 : index
    %c0_8 = arith.constant 0 : index
    %c0_9 = arith.constant 0 : index
    %7 = vector.load %arg2[%c1_7, %c0_8, %c0_9] : memref<3x32x16xf32, #tpu.memory_space<vmem>>, vector<1x32x16xf32>
    %8 = vector.shape_cast %7 : vector<1x32x16xf32> to vector<32x16xf32>
    %cst_10 = arith.constant dense<0.000000e+00> : vector<64x16xf32>
    %9 = tpu.matmul %6, %8, %cst_10 {dimension_numbers = #tpu.dot_dimension_numbers<[1], [0], [0], [1], [0, 0, 1, 1], [], []>} : vector<64x32xf32>, vector<32x16xf32>, vector<64x16xf32> -> vector<64x16xf32>
    %10 = arith.addf %4, %9 : vector<64x16xf32>
    %c0_11 = arith.constant 0 : index
    %c2 = arith.constant 2 : index
    %c0_12 = arith.constant 0 : index
    %11 = tpu.strided_load %arg1[%c0_11, %c2, %c0_12] {strides = array<i32: 1, 2, 1>} : memref<8x18x32xf32, #tpu.memory_space<vmem>>, vector<8x8x32xf32>
    %12 = vector.shape_cast %11 : vector<8x8x32xf32> to vector<64x32xf32>
    %c2_13 = arith.constant 2 : index
    %c0_14 = arith.constant 0 : index
    %c0_15 = arith.constant 0 : index
    %13 = vector.load %arg2[%c2_13, %c0_14, %c0_15] : memref<3x32x16xf32, #tpu.memory_space<vmem>>, vector<1x32x16xf32>
    %14 = vector.shape_cast %13 : vector<1x32x16xf32> to vector<32x16xf32>
    %cst_16 = arith.constant dense<0.000000e+00> : vector<64x16xf32>
    %15 = tpu.matmul %12, %14, %cst_16 {dimension_numbers = #tpu.dot_dimension_numbers<[1], [0], [0], [1], [0, 0, 1, 1], [], []>} : vector<64x32xf32>, vector<32x16xf32>, vector<64x16xf32> -> vector<64x16xf32>
    %16 = arith.addf %10, %15 : vector<64x16xf32>
    %c0_17 = arith.constant 0 : index
    %c0_18 = arith.constant 0 : index
    %17 = vector.load %arg3[%c0_17, %c0_18] : memref<1x16xf32, #tpu.memory_space<vmem>>, vector<1x16xf32>
    %18 = vector.broadcast %17 : vector<1x16xf32> to vector<64x16xf32>
    %19 = arith.addf %16, %18 : vector<64x16xf32>
    %cst_19 = arith.constant 0.000000e+00 : f32
    %20 = vector.broadcast %cst_19 : f32 to vector<64x16xf32>
    %21 = arith.cmpf ogt, %19, %20 : vector<64x16xf32>
    %cst_20 = arith.constant 0.000000e+00 : f32
    %22 = vector.broadcast %cst_20 : f32 to vector<64x16xf32>
    %23 = arith.minimumf %19, %22 : vector<64x16xf32>
    %24 = math.exp %23 : vector<64x16xf32>
    %cst_21 = arith.constant 1.000000e+00 : f32
    %25 = vector.broadcast %cst_21 : f32 to vector<64x16xf32>
    %26 = arith.subf %24, %25 : vector<64x16xf32>
    %27 = arith.select %21, %19, %26 : vector<64x16xi1>, vector<64x16xf32>
    %c0_22 = arith.constant 0 : index
    %c1_23 = arith.constant 1 : index
    %c0_24 = arith.constant 0 : index
    %28 = tpu.strided_load %arg1[%c0_22, %c1_23, %c0_24] {strides = array<i32: 1, 2, 1>} : memref<8x18x32xf32, #tpu.memory_space<vmem>>, vector<8x8x32xf32>
    %29 = vector.shape_cast %28 : vector<8x8x32xf32> to vector<64x32xf32>
    %c0_25 = arith.constant 0 : index
    %c0_26 = arith.constant 0 : index
    %c0_27 = arith.constant 0 : index
    %30 = vector.load %arg2[%c0_25, %c0_26, %c0_27] : memref<3x32x16xf32, #tpu.memory_space<vmem>>, vector<1x32x16xf32>
    %31 = vector.shape_cast %30 : vector<1x32x16xf32> to vector<32x16xf32>
    %cst_28 = arith.constant dense<0.000000e+00> : vector<64x16xf32>
    %32 = tpu.matmul %29, %31, %cst_28 {dimension_numbers = #tpu.dot_dimension_numbers<[1], [0], [0], [1], [0, 0, 1, 1], [], []>} : vector<64x32xf32>, vector<32x16xf32>, vector<64x16xf32> -> vector<64x16xf32>
    %c0_29 = arith.constant 0 : index
    %c2_30 = arith.constant 2 : index
    %c0_31 = arith.constant 0 : index
    %33 = tpu.strided_load %arg1[%c0_29, %c2_30, %c0_31] {strides = array<i32: 1, 2, 1>} : memref<8x18x32xf32, #tpu.memory_space<vmem>>, vector<8x8x32xf32>
    %34 = vector.shape_cast %33 : vector<8x8x32xf32> to vector<64x32xf32>
    %c1_32 = arith.constant 1 : index
    %c0_33 = arith.constant 0 : index
    %c0_34 = arith.constant 0 : index
    %35 = vector.load %arg2[%c1_32, %c0_33, %c0_34] : memref<3x32x16xf32, #tpu.memory_space<vmem>>, vector<1x32x16xf32>
    %36 = vector.shape_cast %35 : vector<1x32x16xf32> to vector<32x16xf32>
    %cst_35 = arith.constant dense<0.000000e+00> : vector<64x16xf32>
    %37 = tpu.matmul %34, %36, %cst_35 {dimension_numbers = #tpu.dot_dimension_numbers<[1], [0], [0], [1], [0, 0, 1, 1], [], []>} : vector<64x32xf32>, vector<32x16xf32>, vector<64x16xf32> -> vector<64x16xf32>
    %38 = arith.addf %32, %37 : vector<64x16xf32>
    %c0_36 = arith.constant 0 : index
    %c3 = arith.constant 3 : index
    %c0_37 = arith.constant 0 : index
    %39 = tpu.strided_load %arg1[%c0_36, %c3, %c0_37] {strides = array<i32: 1, 2, 1>} : memref<8x18x32xf32, #tpu.memory_space<vmem>>, vector<8x8x32xf32>
    %40 = vector.shape_cast %39 : vector<8x8x32xf32> to vector<64x32xf32>
    %c2_38 = arith.constant 2 : index
    %c0_39 = arith.constant 0 : index
    %c0_40 = arith.constant 0 : index
    %41 = vector.load %arg2[%c2_38, %c0_39, %c0_40] : memref<3x32x16xf32, #tpu.memory_space<vmem>>, vector<1x32x16xf32>
    %42 = vector.shape_cast %41 : vector<1x32x16xf32> to vector<32x16xf32>
    %cst_41 = arith.constant dense<0.000000e+00> : vector<64x16xf32>
    %43 = tpu.matmul %40, %42, %cst_41 {dimension_numbers = #tpu.dot_dimension_numbers<[1], [0], [0], [1], [0, 0, 1, 1], [], []>} : vector<64x32xf32>, vector<32x16xf32>, vector<64x16xf32> -> vector<64x16xf32>
    %44 = arith.addf %38, %43 : vector<64x16xf32>
    %c0_42 = arith.constant 0 : index
    %c0_43 = arith.constant 0 : index
    %45 = vector.load %arg3[%c0_42, %c0_43] : memref<1x16xf32, #tpu.memory_space<vmem>>, vector<1x16xf32>
    %46 = vector.broadcast %45 : vector<1x16xf32> to vector<64x16xf32>
    %47 = arith.addf %44, %46 : vector<64x16xf32>
    %cst_44 = arith.constant 0.000000e+00 : f32
    %48 = vector.broadcast %cst_44 : f32 to vector<64x16xf32>
    %49 = arith.cmpf ogt, %47, %48 : vector<64x16xf32>
    %cst_45 = arith.constant 0.000000e+00 : f32
    %50 = vector.broadcast %cst_45 : f32 to vector<64x16xf32>
    %51 = arith.minimumf %47, %50 : vector<64x16xf32>
    %52 = math.exp %51 : vector<64x16xf32>
    %cst_46 = arith.constant 1.000000e+00 : f32
    %53 = vector.broadcast %cst_46 : f32 to vector<64x16xf32>
    %54 = arith.subf %52, %53 : vector<64x16xf32>
    %55 = arith.select %49, %47, %54 : vector<64x16xi1>, vector<64x16xf32>
    %56 = vector.extract_strided_slice %27 {offsets = [1, 0], sizes = [63, 16], strides = [1, 1]} : vector<64x16xf32> to vector<63x16xf32>
    %57 = vector.extract_strided_slice %27 {offsets = [0, 0], sizes = [1, 16], strides = [1, 1]} : vector<64x16xf32> to vector<1x16xf32>
    %58 = tpu.concatenate %56, %57 in 0 : vector<63x16xf32>, vector<1x16xf32> -> vector<64x16xf32>
    %c0_47 = arith.constant 0 : index
    %c0_48 = arith.constant 0 : index
    %c0_49 = arith.constant 0 : index
    %59 = vector.load %arg4[%c0_47, %c0_48, %c0_49] : memref<3x16x16xf32, #tpu.memory_space<vmem>>, vector<1x16x16xf32>
    %60 = vector.shape_cast %59 : vector<1x16x16xf32> to vector<16x16xf32>
    %cst_50 = arith.constant dense<0.000000e+00> : vector<64x16xf32>
    %61 = tpu.matmul %27, %60, %cst_50 {dimension_numbers = #tpu.dot_dimension_numbers<[1], [0], [0], [1], [0, 0, 1, 1], [], []>} : vector<64x16xf32>, vector<16x16xf32>, vector<64x16xf32> -> vector<64x16xf32>
    %c1_51 = arith.constant 1 : index
    %c0_52 = arith.constant 0 : index
    %c0_53 = arith.constant 0 : index
    %62 = vector.load %arg4[%c1_51, %c0_52, %c0_53] : memref<3x16x16xf32, #tpu.memory_space<vmem>>, vector<1x16x16xf32>
    %63 = vector.shape_cast %62 : vector<1x16x16xf32> to vector<16x16xf32>
    %cst_54 = arith.constant dense<0.000000e+00> : vector<64x16xf32>
    %64 = tpu.matmul %55, %63, %cst_54 {dimension_numbers = #tpu.dot_dimension_numbers<[1], [0], [0], [1], [0, 0, 1, 1], [], []>} : vector<64x16xf32>, vector<16x16xf32>, vector<64x16xf32> -> vector<64x16xf32>
    %65 = arith.addf %61, %64 : vector<64x16xf32>
    %c2_55 = arith.constant 2 : index
    %c0_56 = arith.constant 0 : index
    %c0_57 = arith.constant 0 : index
    %66 = vector.load %arg4[%c2_55, %c0_56, %c0_57] : memref<3x16x16xf32, #tpu.memory_space<vmem>>, vector<1x16x16xf32>
    %67 = vector.shape_cast %66 : vector<1x16x16xf32> to vector<16x16xf32>
    %cst_58 = arith.constant dense<0.000000e+00> : vector<64x16xf32>
    %68 = tpu.matmul %58, %67, %cst_58 {dimension_numbers = #tpu.dot_dimension_numbers<[1], [0], [0], [1], [0, 0, 1, 1], [], []>} : vector<64x16xf32>, vector<16x16xf32>, vector<64x16xf32> -> vector<64x16xf32>
    %69 = arith.addf %65, %68 : vector<64x16xf32>
    %c0_59 = arith.constant 0 : index
    %c0_60 = arith.constant 0 : index
    %70 = vector.load %arg5[%c0_59, %c0_60] : memref<1x16xf32, #tpu.memory_space<vmem>>, vector<1x16xf32>
    %71 = vector.broadcast %70 : vector<1x16xf32> to vector<64x16xf32>
    %72 = arith.addf %69, %71 : vector<64x16xf32>
    %cst_61 = arith.constant 0.000000e+00 : f32
    %73 = vector.broadcast %cst_61 : f32 to vector<64x16xf32>
    %74 = arith.cmpf ogt, %72, %73 : vector<64x16xf32>
    %cst_62 = arith.constant 0.000000e+00 : f32
    %75 = vector.broadcast %cst_62 : f32 to vector<64x16xf32>
    %76 = arith.minimumf %72, %75 : vector<64x16xf32>
    %77 = math.exp %76 : vector<64x16xf32>
    %cst_63 = arith.constant 1.000000e+00 : f32
    %78 = vector.broadcast %cst_63 : f32 to vector<64x16xf32>
    %79 = arith.subf %77, %78 : vector<64x16xf32>
    %80 = arith.select %74, %72, %79 : vector<64x16xi1>, vector<64x16xf32>
    %81 = vector.shape_cast %80 : vector<64x16xf32> to vector<8x8x16xf32>
    %c0_64 = arith.constant 0 : index
    %c0_65 = arith.constant 0 : index
    %82 = vector.load %arg10[%c0_64, %c0_65] : memref<8x1xf32, #tpu.memory_space<vmem>>, vector<8x1xf32>
    %83 = vector.shape_cast %82 : vector<8x1xf32> to vector<1x8x1xf32>
    %84 = vector.broadcast %83 : vector<1x8x1xf32> to vector<8x8x16xf32>
    %85 = arith.mulf %81, %84 : vector<8x8x16xf32>
    %cst_66 = arith.constant dense<0.000000e+00> : vector<8x16xf32>
    %86 = vector.multi_reduction <add>, %85, %cst_66 [1] : vector<8x8x16xf32> to vector<8x16xf32>
    %c0_67 = arith.constant 0 : index
    %c0_68 = arith.constant 0 : index
    %87 = vector.load %arg6[%c0_67, %c0_68] : memref<16x32xf32, #tpu.memory_space<vmem>>, vector<16x32xf32>
    %cst_69 = arith.constant dense<0.000000e+00> : vector<8x32xf32>
    %88 = tpu.matmul %86, %87, %cst_69 {dimension_numbers = #tpu.dot_dimension_numbers<[1], [0], [0], [1], [0, 0, 1, 1], [], []>} : vector<8x16xf32>, vector<16x32xf32>, vector<8x32xf32> -> vector<8x32xf32>
    %c0_70 = arith.constant 0 : index
    %c0_71 = arith.constant 0 : index
    %89 = vector.load %arg7[%c0_70, %c0_71] : memref<1x32xf32, #tpu.memory_space<vmem>>, vector<1x32xf32>
    %90 = vector.broadcast %89 : vector<1x32xf32> to vector<8x32xf32>
    %91 = arith.addf %88, %90 : vector<8x32xf32>
    %cst_72 = arith.constant 0.000000e+00 : f32
    %92 = vector.broadcast %cst_72 : f32 to vector<8x32xf32>
    %93 = arith.maximumf %91, %92 : vector<8x32xf32>
    %c0_73 = arith.constant 0 : index
    %c0_74 = arith.constant 0 : index
    %94 = vector.load %arg8[%c0_73, %c0_74] : memref<32x128xf32, #tpu.memory_space<vmem>>, vector<32x128xf32>
    %cst_75 = arith.constant dense<0.000000e+00> : vector<8x128xf32>
    %95 = tpu.matmul %93, %94, %cst_75 {dimension_numbers = #tpu.dot_dimension_numbers<[1], [0], [0], [1], [0, 0, 1, 1], [], []>} : vector<8x32xf32>, vector<32x128xf32>, vector<8x128xf32> -> vector<8x128xf32>
    %c0_76 = arith.constant 0 : index
    %c0_77 = arith.constant 0 : index
    %96 = vector.load %arg9[%c0_76, %c0_77] : memref<1x128xf32, #tpu.memory_space<vmem>>, vector<1x128xf32>
    %97 = vector.broadcast %96 : vector<1x128xf32> to vector<8x128xf32>
    %98 = arith.addf %95, %97 : vector<8x128xf32>
    %cst_78 = arith.constant dense<0xFF800000> : vector<8xf32>
    %99 = vector.multi_reduction <maximumf>, %98, %cst_78 [1] : vector<8x128xf32> to vector<8xf32>
    %100 = vector.shape_cast %99 : vector<8xf32> to vector<8x1xf32>
    %101 = vector.broadcast %100 : vector<8x1xf32> to vector<8x128xf32>
    %102 = arith.subf %98, %101 : vector<8x128xf32>
    %103 = math.exp %102 : vector<8x128xf32>
    %cst_79 = arith.constant dense<0.000000e+00> : vector<8xf32>
    %104 = vector.multi_reduction <add>, %103, %cst_79 [1] : vector<8x128xf32> to vector<8xf32>
    %105 = vector.shape_cast %104 : vector<8xf32> to vector<8x1xf32>
    %106 = math.log %105 : vector<8x1xf32>
    %107 = vector.broadcast %106 : vector<8x1xf32> to vector<8x128xf32>
    %108 = arith.subf %102, %107 : vector<8x128xf32>
    %c0_80 = arith.constant 0 : index
    %c0_81 = arith.constant 0 : index
    %109 = vector.load %arg11[%c0_80, %c0_81] : memref<8x128xf32, #tpu.memory_space<vmem>>, vector<8x128xf32>
    tpu.vector_store %arg11[%c0_80, %c0_81], %108 {strides = array<i32>} : memref<8x128xf32, #tpu.memory_space<vmem>>, vector<8x128xf32>,
    return
  }
  func.func @transform_0(%arg0: i32) -> (i32, i32, i32) {
    %c0_i32 = arith.constant 0 : i32
    %c0_i32_0 = arith.constant 0 : i32
    %c0_i32_1 = arith.constant 0 : i32
    return %arg0, %c0_i32, %c0_i32_0 : i32, i32, i32
  }
  func.func @transform_1(%arg0: i32) -> (i32, i32, i32) {
    %c0_i32 = arith.constant 0 : i32
    %c0_i32_0 = arith.constant 0 : i32
    %c0_i32_1 = arith.constant 0 : i32
    %c0_i32_2 = arith.constant 0 : i32
    return %c0_i32, %c0_i32_0, %c0_i32_1 : i32, i32, i32
  }
  func.func @transform_2(%arg0: i32) -> (i32, i32) {
    %c0_i32 = arith.constant 0 : i32
    %c0_i32_0 = arith.constant 0 : i32
    %c0_i32_1 = arith.constant 0 : i32
    return %c0_i32, %c0_i32_0 : i32, i32
  }
  func.func @transform_3(%arg0: i32) -> (i32, i32, i32) {
    %c0_i32 = arith.constant 0 : i32
    %c0_i32_0 = arith.constant 0 : i32
    %c0_i32_1 = arith.constant 0 : i32
    %c0_i32_2 = arith.constant 0 : i32
    return %c0_i32, %c0_i32_0, %c0_i32_1 : i32, i32, i32
  }
  func.func @transform_4(%arg0: i32) -> (i32, i32) {
    %c0_i32 = arith.constant 0 : i32
    %c0_i32_0 = arith.constant 0 : i32
    %c0_i32_1 = arith.constant 0 : i32
    return %c0_i32, %c0_i32_0 : i32, i32
  }
  func.func @transform_5(%arg0: i32) -> (i32, i32) {
    %c0_i32 = arith.constant 0 : i32
    %c0_i32_0 = arith.constant 0 : i32
    %c0_i32_1 = arith.constant 0 : i32
    return %c0_i32, %c0_i32_0 : i32, i32
  }
  func.func @transform_6(%arg0: i32) -> (i32, i32) {
    %c0_i32 = arith.constant 0 : i32
    %c0_i32_0 = arith.constant 0 : i32
    %c0_i32_1 = arith.constant 0 : i32
    return %c0_i32, %c0_i32_0 : i32, i32
  }
  func.func @transform_7(%arg0: i32) -> (i32, i32) {
    %c0_i32 = arith.constant 0 : i32
    %c0_i32_0 = arith.constant 0 : i32
    %c0_i32_1 = arith.constant 0 : i32
    return %c0_i32, %c0_i32_0 : i32, i32
  }
  func.func @transform_8(%arg0: i32) -> (i32, i32) {
    %c0_i32 = arith.constant 0 : i32
    %c0_i32_0 = arith.constant 0 : i32
    %c0_i32_1 = arith.constant 0 : i32
    return %c0_i32, %c0_i32_0 : i32, i32
  }
  func.func @transform_9(%arg0: i32) -> (i32, i32) {
    %c0_i32 = arith.constant 0 : i32
    %c0_i32_0 = arith.constant 0 : i32
    %c0_i32_1 = arith.constant 0 : i32
    return %c0_i32, %c0_i32_0 : i32, i32
  }
  func.func @transform_10(%arg0: i32) -> (i32, i32) {
    %c0_i32 = arith.constant 0 : i32
    %c0_i32_0 = arith.constant 0 : i32
    return %arg0, %c0_i32 : i32, i32
  }
}

</mosaic_0001>

<bundles_post_ra>
// kernel: tpu_custom_call.1
= control target key start
LH: loop header
LB: loop body
LE: loop exit
PB: predicated region body
PF: predicated region fallthrough
CT: control target
= control target key end

     0   :  { %vm76_vm0 = vcmask 261120   ;;  %s1671_s0 = inlined_call_operand.vmem [shape: f32[8,18,32], index: 0, kind: input, shape index: {}]   ;;  %s1672_s1 = inlined_call_operand.vmem [shape: f32[3,32,16], index: 1, kind: input, shape index: {}]   ;;  %s1673_s2 = inlined_call_operand.vmem [shape: f32[1,16], index: 2, kind: input, shape index: {}]   ;;  %s1674_s3 = inlined_call_operand.vmem [shape: f32[3,16,16], index: 3, kind: input, shape index: {}]   ;;  %s1675_s4 = inlined_call_operand.vmem [shape: f32[1,16], index: 4, kind: input, shape index: {}]   ;;  %s1676_s5 = inlined_call_operand.vmem [shape: f32[16,32], index: 5, kind: input, shape index: {}]   ;;  %s1677_s6 = inlined_call_operand.vmem [shape: f32[1,32], index: 6, kind: input, shape index: {}]   ;;  %s1678_s7 = inlined_call_operand.vmem [shape: f32[32,128], index: 7, kind: input, shape index: {}]   ;;  %s1679_s8 = inlined_call_operand.vmem [shape: f32[1,128], index: 8, kind: input, shape index: {}]   ;;  %s1680_s9 = inlined_call_operand.vmem [shape: f32[8,1], index: 9, kind: input, shape index: {}]   ;;  %s1681_s10 = inlined_call_operand.hbm [shape: f32[8,128], index: 10, kind: output, shape index: {}]  }
   0x1   :  { %v1069_v0 = vld [vmem:[%s1672_s1 + $0x38] sm:$0xff]  ;;  %v1068_v1 = vld [vmem:[%s1672_s1 + $0x30] sm:$0xff]  ;;  %v1067_v2 = vld [vmem:[%s1672_s1 + $0x28] sm:$0xff] }
   0x2   :  { %1192 = vmatpush.msra.mxu1 %v1069_v0  ;;  %113 = vmatpush.msra.mxu0 %v1069_v0  ;;  %v1097_v3 = vld [vmem:[%s1672_s1 + $0x58] sm:$0xff]  ;;  %v1096_v4 = vld [vmem:[%s1672_s1 + $0x50] sm:$0xff]  ;;  %v1066_v5 = vld [vmem:[%s1672_s1 + $0x20] sm:$0xff] }
   0x3   :  { %1193 = vmatpush.msra.mxu3 %v1069_v0  ;;  %264 = vmatpush.msra.mxu2 %v1097_v3  ;;  %v1095_v6 = vld [vmem:[%s1672_s1 + $0x48] sm:$0xff]  ;;  %v54_v8 = vld [vmem:[%s1672_s1 + $0x18] sm:$0xff]  ;;  %v1094_v9 = vld [vmem:[%s1672_s1 + $0x40] sm:$0xff] }
   0x4   :  { %1194 = vmatpush.msra.mxu1 %v1068_v1  ;;  %114 = vmatpush.msra.mxu0 %v1068_v1  ;;  %v1366_v7 = vld [vmem:[%s1671_s0 + $0x49] ss:$2 sm:$0xff]  ;;  %v1086_v10 = vld [vmem:[%s1671_s0 + $0x2] ss:$2 sm:$0xff] }
   0x5   :  { %1195 = vmatpush.msra.mxu3 %v1068_v1  ;;  %265 = vmatpush.msra.mxu2 %v1096_v4  ;;  %v1058_v11 = vld [vmem:[%s1671_s0 + $0x1] ss:$2 sm:$0xff]  ;;  %v53_v12 = vld [vmem:[%s1672_s1 + $0x10] sm:$0xff] }
   0x6   :  { %1196 = vmatpush.msra.mxu1 %v1067_v2  ;;  %115 = vmatpush.msra.mxu0 %v1067_v2 }
   0x7   :  { %1197 = vmatpush.msra.mxu3 %v1067_v2  ;;  %266 = vmatpush.msra.mxu2 %v1095_v6 }
   0x8   :  { %1198 = vmatpush.msra.mxu1 %v1066_v5  ;;  %116 = vmatpush.msra.mxu0 %v1066_v5 }
   0x9   :  { %1073 = vmatmul.msk.f32.vlgmr.msra.gmra.mxu1 %vm76_vm0, %v1366_v7  ;;  %267 = vmatpush.msra.mxu2 %v1094_v9 }
   0xa   :  { %178 = vmatpush.msrb.mxu1 %v54_v8 }
   0xb   :  { %15 = vsyncpa [#allocation3], 0  ;;  %v52_v13 = vld [vmem:[%s1672_s1 + $0x8] sm:$0xff]  ;;  %1098 = vmatmul.msk.f32.vlgmr.msra.gmra.mxu2 %vm76_vm0, %v1086_v10  ;;  %1070 = vmatmul.msk.f32.vlgmr.msra.gmra.mxu0 %vm76_vm0, %v1058_v11  ;;  %v51_v14 = vld [vmem:[%s1672_s1] sm:$0xff]  ;;  %vm620_vm1 = vcmask 130048   ;;  %vm596_vm4 = vcmask 1046528  }
   0xc   :  { %179 = vmatpush.msrb.mxu1 %v53_v12  ;;  %1199 = vmatpush.msra.mxu3 %v1066_v5  ;;  %v1062_v15 = vld [vmem:[%s1671_s0 + $0x61] ss:$2 sm:$0xff]  ;;  %v1087_v16 = vld [vmem:[%s1671_s0 + $0x1a] ss:$2 sm:$0xff]  ;;  %v1060_v21 = vld [vmem:[%s1671_s0 + $0x31] ss:$2 sm:$0xff] }
   0xd   :  { %414 = vmatpush.msrb.mxu0 %v54_v8  ;;  %v1059_v17 = vld [vmem:[%s1671_s0 + $0x19] ss:$2 sm:$0xff]  ;;  %v36_v19 = vld [vmem:[%s1671_s0] ss:$2 sm:$0xff]  ;;  %v1065_v25 = vld [vmem:[%s1671_s0 + $0xa9] ss:$2 sm:$0xff] }
   0xe   :  { %373 = vmatpush.msrb.mxu3 %v1069_v0  ;;  %180 = vmatpush.msrb.mxu1 %v52_v13  ;;  %v1063_v18 = vld [vmem:[%s1671_s0 + $0x79] ss:$2 sm:$0xff]  ;;  %v1088_v20 = vld [vmem:[%s1671_s0 + $0x32] ss:$2 sm:$0xff]  ;;  %v1090_v27 = vld [vmem:[%s1671_s0 + $0x62] ss:$2 sm:$0xff] }
   0xf   :  { %415 = vmatpush.msrb.mxu0 %v53_v12  ;;  %1075 = vmatmul.msk.f32.vlgmr.msra.gmra.mxu3 %vm76_vm0, %v1063_v18  ;;  %v1064_v22 = vld [vmem:[%s1671_s0 + $0x91] ss:$2 sm:$0xff]  ;;  %v1051_v23 = vld [vmem:[%s1671_s0 + $0x18] ss:$2 sm:$0xff]  ;;  %v1053_v28 = vld [vmem:[%s1671_s0 + $0x48] ss:$2 sm:$0xff] }
  0x10   :  { %374 = vmatpush.msrb.mxu3 %v1068_v1  ;;  %181 = vmatpush.msrb.mxu1 %v51_v14  ;;  %v1089_v24 = vld [vmem:[%s1671_s0 + $0x4a] ss:$2 sm:$0xff]  ;;  %v1091_v29 = vld [vmem:[%s1671_s0 + $0x7a] ss:$2 sm:$0xff]  ;;  %v1130_v36 = vld [vmem:[%s1671_s0 + $0x3] ss:$2 sm:$0xff] }
  0x11   :  { %1074 = vmatmul.msk.f32.gmra.mxu1 %vm76_vm0, %v1062_v15  ;;  %416 = vmatpush.msrb.mxu0 %v52_v13  ;;  %v1052_v26 = vld [vmem:[%s1671_s0 + $0x30] ss:$2 sm:$0xff]  ;;  %v1054_v30 = vld [vmem:[%s1671_s0 + $0x60] ss:$2 sm:$0xff]  ;;  %v1131_v37 = vld [vmem:[%s1671_s0 + $0x1b] ss:$2 sm:$0xff] }
  0x12   :  { %375 = vmatpush.msrb.mxu3 %v1067_v2  ;;  %495 = vmatpush.msra.mxu1 %v1097_v3  ;;  %v1092_v31 = vld [vmem:[%s1671_s0 + $0x92] ss:$2 sm:$0xff]  ;;  %v1132_v38 = vld [vmem:[%s1671_s0 + $0x33] ss:$2 sm:$0xff]  ;;  %v1134_v40 = vld [vmem:[%s1671_s0 + $0x63] ss:$2 sm:$0xff] }
  0x13   :  { %1099 = vmatmul.msk.f32.gmra.mxu2 %vm76_vm0, %v1087_v16  ;;  %1071 = vmatmul.msk.f32.gmra.mxu0 %vm76_vm0, %v1059_v17  ;;  %v1055_v32 = vld [vmem:[%s1671_s0 + $0x78] ss:$2 sm:$0xff]  ;;  %v1057_v35 = vld [vmem:[%s1671_s0 + $0xa8] ss:$2 sm:$0xff]  ;;  %v1133_v39 = vld [vmem:[%s1671_s0 + $0x4b] ss:$2 sm:$0xff] }
  0x14   :  { %496 = vmatpush.msra.mxu1 %v1096_v4  ;;  %376 = vmatpush.msrb.mxu3 %v1066_v5  ;;  %v1093_v33 = vld [vmem:[%s1671_s0 + $0xaa] ss:$2 sm:$0xff]  ;;  %v1135_v41 = vld [vmem:[%s1671_s0 + $0x7b] ss:$2 sm:$0xff]  ;;  %v1137_v47 = vld [vmem:[%s1671_s0 + $0xab] ss:$2 sm:$0xff] }
  0x15   :  { %417 = vmatpush.msrb.mxu0 %v51_v14  ;;  %v1056_v34 = vld [vmem:[%s1671_s0 + $0x90] ss:$2 sm:$0xff]  ;;  %v1136_v43 = vld [vmem:[%s1671_s0 + $0x93] ss:$2 sm:$0xff]  ;;  %v616_v44 = vld [vmem:[%s1674_s3 + $0x8] sm:$0xff]  ;;  %s1042_s27 = sshll.u32 %s1681_s10, 4  ;;  %s1043_s27 = int_to_ptr.hbm [resolvable:$true] %s1042_s27 }
  0x16   :  { %497 = vmatpush.msra.mxu1 %v1095_v6  ;;  %716 = vmatpush.msra.mxu3 %v616_v44  ;;  %v615_v45 = vld [vmem:[%s1674_s3] sm:$0xff]  ;;  %v1155_v49 = vld [vmem:[%s1674_s3 + $0x18] sm:$0xff]  ;;  %v1173_v51 = vld [vmem:[%s1674_s3 + $0x28] sm:$0xff] }
  0x17   :  { %1076 = vmatmul.msk.f32.gmra.mxu3 %vm76_vm0, %v1064_v22  ;;  %659 = vmatpush.msrb.mxu2 %v1155_v49  ;;  %v1172_v52 = vld [vmem:[%s1674_s3 + $0x20] sm:$0xff] }
  0x18   :  { %498 = vmatpush.msra.mxu1 %v1094_v9  ;;  %717 = vmatpush.msra.mxu3 %v615_v45  ;;  %v1546_v56 = vld [vmem:[%s1673_s2] ss:$0 sm:$0xff] }
  0x19   :  { %1078 = vmatmul.msk.f32.vlgmr.msrb.gmra.mxu1 %vm76_vm0, %v36_v19  ;;  %777 = vmatpush.msra.mxu0 %v1173_v51 }
  0x1b   :  { %1100 = vmatmul.msk.f32.gmra.mxu2 %vm76_vm0, %v1088_v20  ;;  %1072 = vmatmul.msk.f32.gmra.mxu0 %vm76_vm0, %v1060_v21 }
  0x1c   :  { %778 = vmatpush.msra.mxu0 %v1172_v52 }
  0x1f   :  { %1077 = vmatmul.msk.f32.gmra.mxu3 %vm76_vm0, %v1065_v25 }
  0x21   :  { %1079 = vmatmul.msk.f32.gmra.mxu1 %vm76_vm0, %v1051_v23 }
  0x23   :  { %1101 = vmatmul.msk.f32.gmra.mxu2 %vm76_vm0, %v1089_v24  ;;  %1122 = vmatmul.msk.f32.vlgmr.msrb.gmra.mxu0 %vm76_vm0, %v1058_v11 }
  0x27   :  { %1114 = vmatmul.msk.f32.vlgmr.msrb.gmra.mxu3 %vm76_vm0, %v1086_v10 }
  0x29   :  { %1080 = vmatmul.msk.f32.gmra.mxu1 %vm76_vm0, %v1052_v26 }
  0x2b   :  { %1102 = vmatmul.msk.f32.gmra.mxu2 %vm76_vm0, %v1090_v27  ;;  %1123 = vmatmul.msk.f32.gmra.mxu0 %vm76_vm0, %v1059_v17 }
  0x2f   :  { %1115 = vmatmul.msk.f32.gmra.mxu3 %vm76_vm0, %v1087_v16 }
  0x31   :  { %1081 = vmatmul.msk.f32.gmra.mxu1 %vm76_vm0, %v1053_v28 }
  0x33   :  { %1103 = vmatmul.msk.f32.gmra.mxu2 %vm76_vm0, %v1091_v29  ;;  %1124 = vmatmul.msk.f32.gmra.mxu0 %vm76_vm0, %v1060_v21  ;;  %v1154_v21 = vld [vmem:[%s1674_s3 + $0x10] sm:$0xff] }
  0x34   :  { %660 = vmatpush.msrb.mxu2 %v1154_v21 }
  0x37   :  { %1116 = vmatmul.msk.f32.gmra.mxu3 %vm76_vm0, %v1088_v20 }
  0x39   :  { %1082 = vmatmul.msk.f32.gmra.mxu1 %vm76_vm0, %v1054_v30 }
  0x3b   :  { %1104 = vmatmul.msk.f32.gmra.mxu2 %vm76_vm0, %v1092_v31  ;;  %1125 = vmatmul.msk.f32.gmra.mxu0 %vm76_vm0, %v1366_v7 }
  0x3f   :  { %1117 = vmatmul.msk.f32.gmra.mxu3 %vm76_vm0, %v1089_v24 }
  0x41   :  { %1083 = vmatmul.msk.f32.gmra.mxu1 %vm76_vm0, %v1055_v32 }
  0x43   :  { %1105 = vmatmul.msk.f32.gmra.mxu2 %vm76_vm0, %v1093_v33  ;;  %1126 = vmatmul.msk.f32.gmra.mxu0 %vm76_vm0, %v1062_v15 }
  0x47   :  { %1118 = vmatmul.msk.f32.gmra.mxu3 %vm76_vm0, %v1090_v27 }
  0x49   :  { %1084 = vmatmul.msk.f32.gmra.mxu1 %vm76_vm0, %v1056_v34 }
  0x4b   :  { %1127 = vmatmul.msk.f32.gmra.mxu0 %vm76_vm0, %v1063_v18 }
  0x4f   :  { %1119 = vmatmul.msk.f32.gmra.mxu3 %vm76_vm0, %v1091_v29 }
  0x51   :  { %1085 = vmatmul.msk.f32.gmra.mxu1 %vm76_vm0, %v1057_v35 }
  0x53   :  { %1128 = vmatmul.msk.f32.gmra.mxu0 %vm76_vm0, %v1064_v22 }
  0x57   :  { %1120 = vmatmul.msk.f32.gmra.mxu3 %vm76_vm0, %v1092_v31 }
  0x59   :  { %1138 = vmatmul.msk.f32.vlgmr.msra.gmra.mxu1 %vm76_vm0, %v1130_v36 }
  0x5b   :  { %1129 = vmatmul.msk.f32.gmra.mxu0 %vm76_vm0, %v1065_v25 }
  0x5f   :  { %1121 = vmatmul.msk.f32.gmra.mxu3 %vm76_vm0, %v1093_v33 }
  0x61   :  { %1139 = vmatmul.msk.f32.gmra.mxu1 %vm76_vm0, %v1131_v37 }
  0x69   :  { %1140 = vmatmul.msk.f32.gmra.mxu1 %vm76_vm0, %v1132_v38 }
  0x71   :  { %1141 = vmatmul.msk.f32.gmra.mxu1 %vm76_vm0, %v1133_v39 }
  0x79   :  { %1142 = vmatmul.msk.f32.gmra.mxu1 %vm76_vm0, %v1134_v40 }
  0x81   :  { %1143 = vmatmul.msk.f32.gmra.mxu1 %vm76_vm0, %v1135_v41 }
  0x86   :  { %v127_v42 = vpop.f32.mrf.mxu1 }
  0x88   :  { %v118_v50 = vpop.f32.mrf.mxu0 }
  0x89   :  { %1144 = vmatmul.msk.f32.gmra.mxu1 %vm76_vm0, %v1136_v43 }
  0x8e   :  { %v1528_v46 = vpop.f32.mrf.mxu1  ;;  %v269_v48 = vpop.f32.mrf.mxu2 }
  0x90   :  { %v121_v58 = vpop.f32.mrf.mxu0 }
  0x91   :  { %1145 = vmatmul.msk.f32.gmra.mxu1 %vm76_vm0, %v1137_v47 }
  0x92   :  { %v133_v3 = vpop.f32.mrf.mxu3 }
  0x96   :  { %v183_v53 = vpop.f32.mrf.mxu1  ;;  %v272_v54 = vpop.f32.mrf.mxu2 }
  0x97   :  { %v184_v55 = vadd.f32 %v183_v53, %v118_v50 }
  0x98   :  { %v124_v4 = vpop.f32.mrf.mxu0 }
  0x99   :  { %v293_v57 = vadd.f32 %v269_v48, %v184_v55 }
  0x9a   :  { %v136_v16 = vpop.f32.mrf.mxu3 }
  0x9b   :  { %v305_v59 = vadd.f32 %v1546_v56, %v293_v57 }
  0x9d   :  { %v321_v60 = vmin.f32 %v305_v59, 0.0  ;;  %vm313_vm2 = vcmp.gt.f32.partialorder %v305_v59, 0.0 }
  0x9e   :  { %v186_v61 = vpop.f32.mrf.mxu1  ;;  %v275_v62 = vpop.f32.mrf.mxu2 }
  0x9f   :  { %v329_v63 = vmul.f32 1.442695, %v321_v60  ;;  %v187_v0 = vadd.f32 %v186_v61, %v121_v58 }
  0xa0   :  { %v419_v52 = vpop.f32.mrf.mxu0 }
  0xa1   :  { %1207 = vpow2.f32 %v329_v63  ;;  %v294_v1 = vadd.f32 %v272_v54, %v187_v0 }
  0xa2   :  { %v139_v35 = vpop.f32.mrf.mxu3 }
  0xa3   :  { %v306_v2 = vadd.f32 %v1546_v56, %v294_v1 }
  0xa5   :  { %v322_v5 = vmin.f32 %v306_v2, 0.0  ;;  %vm314_vm3 = vcmp.gt.f32.partialorder %v306_v2, 0.0 }
  0xa6   :  { %v189_v6 = vpop.f32.mrf.mxu1  ;;  %v278_v7 = vpop.f32.mrf.mxu2 }
  0xa7   :  { %v1208_v8 = vpop.eup %1207  ;;  %v331_v9 = vmul.f32 1.442695, %v322_v5  ;;  %v190_v10 = vadd.f32 %v189_v6, %v124_v4 }
  0xa8   :  { %v1106_v11 = vadd.f32 -1.0, %v1208_v8  ;;  %v422_v5 = vpop.f32.mrf.mxu0 }
  0xa9   :  { %v295_v12 = vadd.f32 %v275_v62, %v190_v10  ;;  %1209 = vpow2.f32 %v331_v9 }
  0xaa   :  { %v1550_v13 = vsel %vm313_vm2, %v305_v59, %v1106_v11  ;;  %v378_v50 = vpop.f32.mrf.mxu3 }
  0xab   :  { %v307_v14 = vadd.f32 %v1546_v56, %v295_v12  ;;  %1164 = vmatmul.msk.f32.vlgmr.msra.gmra.mxu3 %vm620_vm1, %v1550_v13  ;;  %v597_v26 = vrot.slane %v1550_v13, 1 }
  0xad   :  { %v323_v15 = vmin.f32 %v307_v14, 0.0  ;;  %vm315_vm5 = vcmp.gt.f32.partialorder %v307_v14, 0.0 }
  0xae   :  { %v192_v17 = vpop.f32.mrf.mxu1  ;;  %v281_v23 = vpop.f32.mrf.mxu2 }
  0xaf   :  { %v1210_v18 = vpop.eup %1209  ;;  %v333_v19 = vmul.f32 1.442695, %v323_v15  ;;  %v193_v20 = vadd.f32 %v192_v17, %v127_v42 }
  0xb0   :  { %v1107_v22 = vadd.f32 -1.0, %v1210_v18 }
  0xb1   :  { %v296_v24 = vadd.f32 %v278_v7, %v193_v20  ;;  %1211 = vpow2.f32 %v333_v19  ;;  %v420_v19 = vadd.f32 %v419_v52, %v378_v50 }
  0xb2   :  { %v354_v25 = vsel %vm314_vm3, %v306_v2, %v1107_v22  ;;  %v381_v4 = vpop.f32.mrf.mxu3 }
  0xb3   :  { %v308_v27 = vadd.f32 %v1546_v56, %v296_v24  ;;  %v598_v28 = vrot.slane %v354_v25, 1  ;;  %1165 = vmatmul.msk.f32.gmra.mxu3 %vm620_vm1, %v354_v25  ;;  %v425_v24 = vpop.f32.mrf.mxu0 }
  0xb5   :  { %v324_v29 = vmin.f32 %v308_v27, 0.0  ;;  %v599_v30 = vsel %vm596_vm4, %v597_v26, %v598_v28  ;;  %vm316_vm6 = vcmp.gt.f32.partialorder %v308_v27, 0.0 }
  0xb6   :  { %v195_v31 = vpop.f32.mrf.mxu1  ;;  %1174 = vmatmul.msk.f32.vlgmr.msra.gmra.mxu0 %vm620_vm1, %v599_v30  ;;  %v284_v39 = vpop.f32.mrf.mxu2 }
  0xb7   :  { %v1212_v32 = vpop.eup %1211  ;;  %v335_v33 = vmul.f32 1.442695, %v324_v29  ;;  %v196_v34 = vadd.f32 %v195_v31, %v1528_v46 }
  0xb8   :  { %v1108_v36 = vadd.f32 -1.0, %v1212_v32 }
  0xb9   :  { %v297_v37 = vadd.f32 %v281_v23, %v196_v34  ;;  %1213 = vpow2.f32 %v335_v33  ;;  %v423_v34 = vadd.f32 %v422_v5, %v381_v4 }
  0xba   :  { %v355_v38 = vsel %vm315_vm5, %v307_v14, %v1108_v36  ;;  %v384_v22 = vpop.f32.mrf.mxu3 }
  0xbb   :  { %v309_v40 = vadd.f32 %v1546_v56, %v297_v37  ;;  %v600_v41 = vrot.slane %v355_v38, 1  ;;  %1166 = vmatmul.msk.f32.gmra.mxu3 %vm620_vm1, %v355_v38 }
  0xbd   :  { %v325_v42 = vmin.f32 %v309_v40, 0.0  ;;  %v601_v43 = vsel %vm596_vm4, %v598_v28, %v600_v41  ;;  %vm317_vm7 = vcmp.gt.f32.partialorder %v309_v40, 0.0 }
  0xbe   :  { %v198_v44 = vpop.f32.mrf.mxu1  ;;  %1175 = vmatmul.msk.f32.gmra.mxu0 %vm620_vm1, %v601_v43  ;;  %v287_v55 = vpop.f32.mrf.mxu2 }
  0xbf   :  { %v1214_v45 = vpop.eup %1213  ;;  %v337_v46 = vmul.f32 1.442695, %v325_v42  ;;  %v199_v47 = vadd.f32 %v198_v44, %v133_v3  ;;  %v428_v42 = vpop.f32.mrf.mxu0 }
  0xc0   :  { %v1109_v48 = vadd.f32 -1.0, %v1214_v45 }
  0xc1   :  { %v298_v49 = vadd.f32 %v284_v39, %v199_v47  ;;  %1215 = vpow2.f32 %v337_v46  ;;  %v426_v47 = vadd.f32 %v425_v24, %v384_v22 }
  0xc2   :  { %v356_v51 = vsel %vm316_vm6, %v308_v27, %v1109_v48 }
  0xc3   :  { %v310_v53 = vadd.f32 %v1546_v56, %v298_v49  ;;  %v602_v54 = vrot.slane %v356_v51, 1  ;;  %1167 = vmatmul.msk.f32.gmra.mxu3 %vm620_vm1, %v356_v51 }
  0xc5   :  { %v326_v57 = vmin.f32 %v310_v53, 0.0  ;;  %v603_v58 = vsel %vm596_vm4, %v600_v41, %v602_v54  ;;  %vm318_vm8 = vcmp.gt.f32.partialorder %v310_v53, 0.0 }
  0xc6   :  { %v201_v59 = vpop.f32.mrf.mxu1  ;;  %1176 = vmatmul.msk.f32.gmra.mxu0 %vm620_vm1, %v603_v58  ;;  %v290_v9 = vpop.f32.mrf.mxu2 }
  0xc7   :  { %v1216_v60 = vpop.eup %1215  ;;  %v339_v61 = vmul.f32 1.442695, %v326_v57  ;;  %v202_v62 = vadd.f32 %v201_v59, %v136_v16  ;;  %v431_v58 = vpop.f32.mrf.mxu0 }
  0xc8   :  { %v1110_v63 = vadd.f32 -1.0, %v1216_v60 }
  0xc9   :  { %v299_v0 = vadd.f32 %v287_v55, %v202_v62  ;;  %1217 = vpow2.f32 %v339_v61 }
  0xca   :  { %v357_v1 = vsel %vm317_vm7, %v309_v40, %v1110_v63  ;;  %v387_v40 = vpop.f32.mrf.mxu3 }
  0xcb   :  { %v311_v2 = vadd.f32 %v1546_v56, %v299_v0  ;;  %v604_v3 = vrot.slane %v357_v1, 1  ;;  %1168 = vmatmul.msk.f32.gmra.mxu3 %vm620_vm1, %v357_v1  ;;  %v429_v60 = vadd.f32 %v428_v42, %v387_v40  ;;  %v1285_v0 = vmov 0   ;;  %v872_v1 = vld [vmem:[%s1680_s9] sm:$0xff] }
  0xcc   :  { %1202 = vset.pattern.permute.xlu0 %v1285_v0 }
  0xcd   :  { %v327_v6 = vmin.f32 %v311_v2, 0.0  ;;  %v605_v7 = vsel %vm596_vm4, %v602_v54, %v604_v3  ;;  %vm319_vm9 = vcmp.gt.f32.partialorder %v311_v2, 0.0  ;;  %875 = vperm.xlu0 %1202, %v872_v1  }
  0xce   :  { %v204_v8 = vpop.f32.mrf.mxu1  ;;  %1177 = vmatmul.msk.f32.gmra.mxu0 %vm620_vm1, %v605_v7 }
  0xcf   :  { %v1218_v10 = vpop.eup %1217  ;;  %v341_v11 = vmul.f32 1.442695, %v327_v6  ;;  %v205_v12 = vadd.f32 %v204_v8, %v139_v35  ;;  %v434_v8 = vpop.f32.mrf.mxu0 }
  0xd0   :  { %v1111_v14 = vadd.f32 -1.0, %v1218_v10 }
  0xd1   :  { %v300_v15 = vadd.f32 %v290_v9, %v205_v12  ;;  %1219 = vpow2.f32 %v341_v11 }
  0xd2   :  { %v358_v16 = vsel %vm318_vm8, %v310_v53, %v1111_v14  ;;  %v390_v57 = vpop.f32.mrf.mxu3 }
  0xd3   :  { %v312_v17 = vadd.f32 %v1546_v56, %v300_v15  ;;  %v606_v18 = vrot.slane %v358_v16, 1  ;;  %1169 = vmatmul.msk.f32.gmra.mxu3 %vm620_vm1, %v358_v16 }
  0xd5   :  { %v328_v20 = vmin.f32 %v312_v17, 0.0  ;;  %v607_v21 = vsel %vm596_vm4, %v604_v3, %v606_v18  ;;  %vm320_vm10 = vcmp.gt.f32.partialorder %v312_v17, 0.0 }
  0xd6   :  { %v500_v23 = vpop.f32.mrf.mxu1  ;;  %1178 = vmatmul.msk.f32.gmra.mxu0 %vm620_vm1, %v607_v21 }
  0xd7   :  { %v1220_v25 = vpop.eup %1219  ;;  %v343_v27 = vmul.f32 1.442695, %v328_v20  ;;  %v524_v28 = vadd.f32 %v500_v23, %v420_v19  ;;  %v437_v24 = vpop.f32.mrf.mxu0 }
  0xd8   :  { %v1112_v29 = vadd.f32 -1.0, %v1220_v25 }
  0xd9   :  { %v532_v30 = vadd.f32 %v1546_v56, %v524_v28  ;;  %1221 = vpow2.f32 %v343_v27 }
  0xda   :  { %v359_v31 = vsel %vm319_vm9, %v311_v2, %v1112_v29  ;;  %v393_v7 = vpop.f32.mrf.mxu3 }
  0xdb   :  { %v548_v32 = vmin.f32 %v532_v30, 0.0  ;;  %v608_v33 = vrot.slane %v359_v31, 1  ;;  %1170 = vmatmul.msk.f32.gmra.mxu3 %vm620_vm1, %v359_v31  ;;  %vm540_vm11 = vcmp.gt.f32.partialorder %v532_v30, 0.0 }
  0xdd   :  { %v556_v35 = vmul.f32 1.442695, %v548_v32  ;;  %v609_v36 = vsel %vm596_vm4, %v606_v18, %v608_v33  ;;  %v435_v18 = vadd.f32 %v434_v8, %v393_v7 }
  0xde   :  { %v503_v37 = vpop.f32.mrf.mxu1  ;;  %1179 = vmatmul.msk.f32.gmra.mxu0 %vm620_vm1, %v609_v36 }
  0xdf   :  { %v1222_v38 = vpop.eup %1221  ;;  %1223 = vpow2.f32 %v556_v35  ;;  %v525_v39 = vadd.f32 %v503_v37, %v423_v34 }
  0xe0   :  { %v1113_v41 = vadd.f32 -1.0, %v1222_v38  ;;  %v440_v38 = vpop.f32.mrf.mxu0 }
  0xe1   :  { %v533_v43 = vadd.f32 %v1546_v56, %v525_v39 }
  0xe2   :  { %v360_v44 = vsel %vm320_vm10, %v312_v17, %v1113_v41  ;;  %v396_v21 = vpop.f32.mrf.mxu3 }
  0xe3   :  { %v549_v45 = vmin.f32 %v533_v43, 0.0  ;;  %v610_v46 = vrot.slane %v360_v44, 1  ;;  %1171 = vmatmul.msk.f32.gmra.mxu3 %vm620_vm1, %v360_v44  ;;  %vm541_vm12 = vcmp.gt.f32.partialorder %v533_v43, 0.0 }
  0xe5   :  { %v1224_v48 = vpop.eup %1223  ;;  %v558_v49 = vmul.f32 1.442695, %v549_v45  ;;  %v611_v50 = vsel %vm596_vm4, %v608_v33, %v610_v46  ;;  %v614_v63 = vsel %vm596_vm4, %v610_v46, %v597_v26  ;;  %v432_v26 = vadd.f32 %v431_v58, %v390_v57 }
  0xe6   :  { %v506_v51 = vpop.f32.mrf.mxu1  ;;  %1180 = vmatmul.msk.f32.gmra.mxu0 %vm620_vm1, %v611_v50  ;;  %v1146_v52 = vadd.f32 -1.0, %v1224_v48 }
  0xe7   :  { %v526_v53 = vadd.f32 %v506_v51, %v426_v47  ;;  %1225 = vpow2.f32 %v558_v49 }
  0xe8   :  { %v580_v54 = vsel %vm540_vm11, %v532_v30, %v1146_v52  ;;  %v438_v30 = vadd.f32 %v437_v24, %v396_v21 }
  0xe9   :  { %v534_v55 = vadd.f32 %v1546_v56, %v526_v53  ;;  %1156 = vmatmul.msk.f32.vlgmr.msrb.gmra.mxu2 %vm620_vm1, %v580_v54 }
  0xea   :  { %v399_v37 = vpop.f32.mrf.mxu3 }
  0xeb   :  { %v550_v59 = vmin.f32 %v534_v55, 0.0  ;;  %vm542_vm13 = vcmp.gt.f32.partialorder %v534_v55, 0.0  ;;  %v441_v41 = vadd.f32 %v440_v38, %v399_v37 }
  0xed   :  { %v1226_v61 = vpop.eup %1225  ;;  %v560_v62 = vmul.f32 1.442695, %v550_v59 }
  0xee   :  { %v509_v2 = vpop.f32.mrf.mxu1  ;;  %1181 = vmatmul.msk.f32.gmra.mxu0 %vm620_vm1, %v614_v63  ;;  %v1147_v3 = vadd.f32 -1.0, %v1226_v61 }
  0xef   :  { %v527_v4 = vadd.f32 %v509_v2, %v429_v60  ;;  %1227 = vpow2.f32 %v560_v62 }
  0xf0   :  { %v581_v5 = vsel %vm541_vm12, %v533_v43, %v1147_v3 }
  0xf1   :  { %v535_v6 = vadd.f32 %v1546_v56, %v527_v4  ;;  %1157 = vmatmul.msk.f32.gmra.mxu2 %vm620_vm1, %v581_v5 }
  0xf3   :  { %v551_v13 = vmin.f32 %v535_v6, 0.0  ;;  %vm543_vm14 = vcmp.gt.f32.partialorder %v535_v6, 0.0 }
  0xf5   :  { %v1228_v9 = vpop.eup %1227  ;;  %v562_v10 = vmul.f32 1.442695, %v551_v13 }
  0xf6   :  { %v512_v11 = vpop.f32.mrf.mxu1  ;;  %v1148_v12 = vadd.f32 -1.0, %v1228_v9 }
  0xf7   :  { %v528_v14 = vadd.f32 %v512_v11, %v432_v26  ;;  %1229 = vpow2.f32 %v562_v10  ;;  %v1614_v26 = vld [vmem:[%s1675_s4] ss:$0 sm:$0xff] }
  0xf8   :  { %v582_v15 = vsel %vm542_vm13, %v534_v55, %v1148_v12  ;;  %vm956_vm13 = vcmask 1041409  }
  0xf9   :  { %v536_v16 = vadd.f32 %v1546_v56, %v528_v14  ;;  %1158 = vmatmul.msk.f32.gmra.mxu2 %vm620_vm1, %v582_v15  ;;  %v943_v14 = vld [vmem:[%s1676_s5 + $0x8] sm:$0xff] }
  0xfa   :  { %986 = vmatpush.msrb.mxu1 %v943_v14 }
  0xfb   :  { %v552_v17 = vmin.f32 %v536_v16, 0.0  ;;  %vm544_vm15 = vcmp.gt.f32.partialorder %v536_v16, 0.0 }
  0xfd   :  { %v1230_v19 = vpop.eup %1229  ;;  %v564_v20 = vmul.f32 1.442695, %v552_v17 }
  0xfe   :  { %v515_v22 = vpop.f32.mrf.mxu1  ;;  %v1149_v23 = vadd.f32 -1.0, %v1230_v19 }
  0xff   :  { %v529_v25 = vadd.f32 %v515_v22, %v435_v18  ;;  %1231 = vpow2.f32 %v564_v20 }
 0x100   :  { %v583_v27 = vsel %vm543_vm14, %v535_v6, %v1149_v23  ;;  %vm958_vm14 = vcmask 1042434  }
 0x101   :  { %v537_v28 = vadd.f32 %v1546_v56, %v529_v25  ;;  %1159 = vmatmul.msk.f32.gmra.mxu2 %vm620_vm1, %v583_v27 }
 0x103   :  { %v553_v29 = vmin.f32 %v537_v28, 0.0  ;;  %vm545_vm2 = vcmp.gt.f32.partialorder %v537_v28, 0.0 }
 0x105   :  { %v1232_v31 = vpop.eup %1231  ;;  %v566_v32 = vmul.f32 1.442695, %v553_v29 }
 0x106   :  { %v518_v33 = vpop.f32.mrf.mxu1  ;;  %v1150_v34 = vadd.f32 -1.0, %v1232_v31 }
 0x107   :  { %v530_v35 = vadd.f32 %v518_v33, %v438_v30  ;;  %1233 = vpow2.f32 %v566_v32 }
 0x108   :  { %v584_v36 = vsel %vm544_vm15, %v536_v16, %v1150_v34  ;;  %vm960_vm15 = vcmask 1043459  }
 0x109   :  { %v538_v39 = vadd.f32 %v1546_v56, %v530_v35  ;;  %1160 = vmatmul.msk.f32.gmra.mxu2 %vm620_vm1, %v584_v36 }
 0x10b   :  { %v554_v40 = vmin.f32 %v538_v39, 0.0  ;;  %vm546_vm3 = vcmp.gt.f32.partialorder %v538_v39, 0.0 }
 0x10d   :  { %v1234_v42 = vpop.eup %1233  ;;  %v568_v43 = vmul.f32 1.442695, %v554_v40 }
 0x10e   :  { %v521_v44 = vpop.f32.mrf.mxu1  ;;  %v1151_v45 = vadd.f32 -1.0, %v1234_v42 }
 0x10f   :  { %v531_v46 = vadd.f32 %v521_v44, %v441_v41  ;;  %1235 = vpow2.f32 %v568_v43 }
 0x110   :  { %v585_v47 = vsel %vm545_vm2, %v537_v28, %v1151_v45  ;;  %vm962_vm2 = vcmask 1044484  }
 0x111   :  { %v539_v48 = vadd.f32 %v1546_v56, %v531_v46  ;;  %1161 = vmatmul.msk.f32.gmra.mxu2 %vm620_vm1, %v585_v47 }
 0x113   :  { %v555_v49 = vmin.f32 %v539_v48, 0.0  ;;  %vm547_vm4 = vcmp.gt.f32.partialorder %v539_v48, 0.0 }
 0x115   :  { %v1236_v50 = vpop.eup %1235  ;;  %v570_v51 = vmul.f32 1.442695, %v555_v49 }
 0x116   :  { %v1152_v52 = vadd.f32 -1.0, %v1236_v50 }
 0x117   :  { %1237 = vpow2.f32 %v570_v51 }
 0x118   :  { %v586_v53 = vsel %vm546_vm3, %v538_v39, %v1152_v52  ;;  %vm964_vm3 = vcmask 1045509  }
 0x119   :  { %1162 = vmatmul.msk.f32.gmra.mxu2 %vm620_vm1, %v586_v53 }
 0x11d   :  { %v1238_v54 = vpop.eup %1237 }
 0x11e   :  { %v1153_v55 = vadd.f32 -1.0, %v1238_v54 }
 0x120   :  { %v587_v57 = vsel %vm547_vm4, %v539_v48, %v1153_v55  ;;  %vm966_vm4 = vcmask 1046534  }
 0x121   :  { %1163 = vmatmul.msk.f32.gmra.mxu2 %vm620_vm1, %v587_v57  ;;  %v942_v57 = vld [vmem:[%s1676_s5] sm:$0xff] }
 0x122   :  { %987 = vmatpush.msrb.mxu1 %v942_v57 }
 0x12e   :  { %v719_v58 = vpop.f32.mrf.mxu3 }
 0x133   :  { %v780_v59 = vpop.f32.mrf.mxu0 }
 0x136   :  { %v722_v56 = vpop.f32.mrf.mxu3 }
 0x13b   :  { %v783_v60 = vpop.f32.mrf.mxu0 }
 0x13e   :  { %v725_v62 = vpop.f32.mrf.mxu3 }
 0x143   :  { %v786_v63 = vpop.f32.mrf.mxu0 }
 0x146   :  { %v728_v1 = vpop.f32.mrf.mxu3 }
 0x14b   :  { %v789_v3 = vpop.f32.mrf.mxu0 }
 0x14e   :  { %v731_v11 = vpop.f32.mrf.mxu3 }
 0x153   :  { %v792_v17 = vpop.f32.mrf.mxu0 }
 0x156   :  { %v734_v30 = vpop.f32.mrf.mxu3 }
 0x15b   :  { %v795_v34 = vpop.f32.mrf.mxu0 }
 0x15e   :  { %v737_v44 = vpop.f32.mrf.mxu3 }
 0x163   :  { %v798_v47 = vpop.f32.mrf.mxu0 }
 0x16c   :  { %v662_v61 = vpop.f32.mrf.mxu2 }
 0x16d   :  { %v720_v4 = vadd.f32 %v719_v58, %v662_v61 }
 0x16f   :  { %v804_v13 = vadd.f32 %v780_v59, %v720_v4  ;;  %v740_v4 = vpop.f32.mrf.mxu3 }
 0x171   :  { %v816_v12 = vadd.f32 %v1614_v26, %v804_v13 }
 0x173   :  { %v832_v20 = vmin.f32 %v816_v12, 0.0  ;;  %vm824_vm7 = vcmp.gt.f32.partialorder %v816_v12, 0.0 }
 0x174   :  { %v665_v0 = vpop.f32.mrf.mxu2 }
 0x175   :  { %v723_v5 = vadd.f32 %v722_v56, %v665_v0  ;;  %v840_v27 = vmul.f32 1.442695, %v832_v20 }
 0x177   :  { %v805_v7 = vadd.f32 %v783_v60, %v723_v5  ;;  %1239 = vpow2.f32 %v840_v27 }
 0x179   :  { %v817_v15 = vadd.f32 %v1614_v26, %v805_v7 }
 0x17b   :  { %v833_v21 = vmin.f32 %v817_v15, 0.0  ;;  %vm825_vm5 = vcmp.gt.f32.partialorder %v817_v15, 0.0 }
 0x17c   :  { %v668_v2 = vpop.f32.mrf.mxu2 }
 0x17d   :  { %v726_v6 = vadd.f32 %v725_v62, %v668_v2  ;;  %v842_v28 = vmul.f32 1.442695, %v833_v21  ;;  %v1240_v40 = vpop.eup %1239 }
 0x17e   :  { %v1182_v54 = vadd.f32 -1.0, %v1240_v40 }
 0x17f   :  { %v806_v8 = vadd.f32 %v786_v63, %v726_v6  ;;  %1241 = vpow2.f32 %v842_v28  ;;  %v1629_v63 = vpop.permute.xlu0 %875 }
 0x180   :  { %v864_v62 = vsel %vm824_vm7, %v816_v12, %v1182_v54 }
 0x181   :  { %v818_v18 = vadd.f32 %v1614_v26, %v806_v8  ;;  %v878_v7 = vmul.f32 %v1629_v63, %v864_v62 }
 0x183   :  { %v834_v22 = vmin.f32 %v818_v18, 0.0  ;;  %vm826_vm6 = vcmp.gt.f32.partialorder %v818_v18, 0.0 }
 0x184   :  { %v671_v9 = vpop.f32.mrf.mxu2 }
 0x185   :  { %v729_v10 = vadd.f32 %v728_v1, %v671_v9  ;;  %v844_v31 = vmul.f32 1.442695, %v834_v22  ;;  %v1242_v41 = vpop.eup %1241 }
 0x186   :  { %v1183_v48 = vadd.f32 -1.0, %v1242_v41 }
 0x187   :  { %v807_v16 = vadd.f32 %v789_v3, %v729_v10  ;;  %1243 = vpow2.f32 %v844_v31 }
 0x188   :  { %v865_v56 = vsel %vm825_vm5, %v817_v15, %v1183_v48  ;;  %vm968_vm5 = vcmask 1047559  }
 0x189   :  { %v819_v19 = vadd.f32 %v1614_v26, %v807_v16  ;;  %v879_v1 = vmul.f32 %v1629_v63, %v865_v56 }
 0x18b   :  { %v835_v24 = vmin.f32 %v819_v19, 0.0  ;;  %vm827_vm8 = vcmp.gt.f32.partialorder %v819_v19, 0.0  ;;  %v893_v15 = vsel %vm620_vm1, %v879_v1, 0.0 }
 0x18c   :  { %v674_v23 = vpop.f32.mrf.mxu2 }
 0x18d   :  { %v732_v25 = vadd.f32 %v731_v11, %v674_v23  ;;  %v846_v32 = vmul.f32 1.442695, %v835_v24  ;;  %v1244_v43 = vpop.eup %1243  ;;  %v801_v11 = vpop.f32.mrf.mxu0  ;;  %v996_v23 = vld [vmem:[%s1678_s7 + $0x18] sm:$0xff]  ;;  %v995_v24 = vld [vmem:[%s1678_s7 + $0x10] sm:$0xff] }
 0x18e   :  { %v1184_v51 = vadd.f32 -1.0, %v1244_v43  ;;  %1016 = vmatpush.msra.mxu2 %v996_v23 }
 0x18f   :  { %v808_v29 = vadd.f32 %v792_v17, %v732_v25  ;;  %1245 = vpow2.f32 %v846_v32  ;;  %v894_v25 = vrot.slane %v893_v15, 4 }
 0x190   :  { %v866_v60 = vsel %vm826_vm6, %v818_v18, %v1184_v51  ;;  %1017 = vmatpush.msra.mxu2 %v995_v24 }
 0x191   :  { %v820_v33 = vadd.f32 %v1614_v26, %v808_v29  ;;  %v880_v5 = vmul.f32 %v1629_v63, %v866_v60 }
 0x193   :  { %v836_v35 = vmin.f32 %v820_v33, 0.0  ;;  %vm828_vm9 = vcmp.gt.f32.partialorder %v820_v33, 0.0  ;;  %v900_v17 = vsel %vm620_vm1, %v880_v5, 0.0 }
 0x194   :  { %v677_v36 = vpop.f32.mrf.mxu2  ;;  %v901_v28 = vrot.slane %v900_v17, 4 }
 0x195   :  { %v848_v37 = vmul.f32 1.442695, %v836_v35  ;;  %v735_v38 = vadd.f32 %v734_v30, %v677_v36  ;;  %v1246_v45 = vpop.eup %1245  ;;  %v993_v36 = vld [vmem:[%s1678_s7] sm:$0xff] }
 0x196   :  { %v1185_v55 = vadd.f32 -1.0, %v1246_v45  ;;  %v902_v40 = vadd.f32 %v901_v28, %v900_v17 }
 0x197   :  { %1247 = vpow2.f32 %v848_v37  ;;  %v809_v39 = vadd.f32 %v795_v34, %v735_v38  ;;  %v895_v37 = vadd.f32 %v894_v25, %v893_v15 }
 0x198   :  { %v867_v0 = vsel %vm827_vm8, %v819_v19, %v1185_v55  ;;  %v886_v19 = vsel %vm620_vm1, %v878_v7, 0.0  ;;  %v903_v48 = vrot.slane %v902_v40, 2 }
 0x199   :  { %v821_v42 = vadd.f32 %v1614_v26, %v809_v39  ;;  %v881_v8 = vmul.f32 %v1629_v63, %v867_v0  ;;  %v887_v31 = vrot.slane %v886_v19, 4 }
 0x19a   :  { %v904_v56 = vadd.f32 %v903_v48, %v902_v40 }
 0x19b   :  { %v837_v46 = vmin.f32 %v821_v42, 0.0  ;;  %vm829_vm10 = vcmp.gt.f32.partialorder %v821_v42, 0.0  ;;  %v907_v20 = vsel %vm620_vm1, %v881_v8, 0.0  ;;  %v888_v41 = vadd.f32 %v887_v31, %v886_v19 }
 0x19c   :  { %v680_v49 = vpop.f32.mrf.mxu2  ;;  %v908_v32 = vrot.slane %v907_v20, 4 }
 0x19d   :  { %v1248_v50 = vpop.eup %1247  ;;  %v850_v52 = vmul.f32 1.442695, %v837_v46  ;;  %v738_v53 = vadd.f32 %v737_v44, %v680_v49  ;;  %v896_v46 = vrot.slane %v895_v37, 2 }
 0x19e   :  { %v1186_v58 = vadd.f32 -1.0, %v1248_v50  ;;  %v889_v50 = vrot.slane %v888_v41, 2 }
 0x19f   :  { %1249 = vpow2.f32 %v850_v52  ;;  %v810_v59 = vadd.f32 %v798_v47, %v738_v53  ;;  %v897_v55 = vadd.f32 %v896_v46, %v895_v37 }
 0x1a0   :  { %v868_v2 = vsel %vm828_vm9, %v820_v33, %v1186_v58  ;;  %v890_v60 = vadd.f32 %v889_v50, %v888_v41 }
 0x1a1   :  { %v822_v61 = vadd.f32 %v1614_v26, %v810_v59  ;;  %v882_v12 = vmul.f32 %v1629_v63, %v868_v2 }
 0x1a3   :  { %v838_v3 = vmin.f32 %v822_v61, 0.0  ;;  %v914_v27 = vsel %vm620_vm1, %v882_v12, 0.0  ;;  %vm830_vm11 = vcmp.gt.f32.partialorder %v822_v61, 0.0 }
 0x1a4   :  { %v683_v6 = vpop.f32.mrf.mxu2  ;;  %v915_v34 = vrot.slane %v914_v27, 4 }
 0x1a5   :  { %v1250_v13 = vpop.eup %1249  ;;  %v852_v9 = vmul.f32 1.442695, %v838_v3  ;;  %v741_v10 = vadd.f32 %v740_v4, %v683_v6  ;;  %v898_v4 = vrot.slane %v897_v55, 1  ;;  %v905_v6 = vrot.slane %v904_v56, 1 }
 0x1a6   :  { %v1187_v14 = vadd.f32 -1.0, %v1250_v13  ;;  %v916_v44 = vadd.f32 %v915_v34, %v914_v27 }
 0x1a7   :  { %1251 = vpow2.f32 %v852_v9  ;;  %v811_v16 = vadd.f32 %v801_v11, %v741_v10  ;;  %v891_v9 = vrot.slane %v890_v60, 1  ;;  %v899_v12 = vadd.f32 %v898_v4, %v897_v55 }
 0x1a8   :  { %v869_v18 = vsel %vm829_vm10, %v821_v42, %v1187_v14  ;;  %v909_v42 = vadd.f32 %v908_v32, %v907_v20  ;;  %v917_v54 = vrot.slane %v916_v44, 2  ;;  %v906_v15 = vadd.f32 %v905_v6, %v904_v56  ;;  %v1205_v32 = vld [vmem:[%s1677_s6] ss:$0 sm:$0xff]  ;;  %s1286_s6 = smov [#allocation2]  }
 0x1a9   :  { %v883_v21 = vmul.f32 %v1629_v63, %v869_v18  ;;  %v823_v22 = vadd.f32 %v1614_v26, %v811_v16  ;;  %v994_v26 = vld [vmem:[%s1678_s7 + $0x8] sm:$0xff]  ;;  %v892_v18 = vadd.f32 %v891_v9, %v890_v60  ;;  %s1040_s24 = sshll.u32 %s1286_s6, 4  ;;  %s1041_s24 = int_to_ptr.vmem [resolvable:$true] %s1040_s24 }
 0x1aa   :  { %1018 = vmatpush.msra.mxu2 %v994_v26  ;;  %v910_v51 = vrot.slane %v909_v42, 2  ;;  %v918_v1 = vadd.f32 %v917_v54, %v916_v44 }
 0x1ab   :  { %v921_v29 = vsel %vm620_vm1, %v883_v21, 0.0  ;;  %v839_v30 = vmin.f32 %v823_v22, 0.0  ;;  %vm831_vm12 = vcmp.gt.f32.partialorder %v823_v22, 0.0 }
 0x1ac   :  { %v922_v38 = vrot.slane %v921_v29, 4  ;;  %1019 = vmatpush.msra.mxu2 %v993_v36  ;;  %v919_v10 = vrot.slane %v918_v1, 1  ;;  %v1206_v36 = vld [vmem:[%s1679_s8] ss:$0 sm:$0xff] }
 0x1ad   :  { %v1252_v33 = vpop.eup %1251  ;;  %v854_v35 = vmul.f32 1.442695, %v839_v30 }
 0x1ae   :  { %v1188_v39 = vadd.f32 -1.0, %v1252_v33  ;;  %v923_v47 = vadd.f32 %v922_v38, %v921_v29 }
 0x1af   :  { %1253 = vpow2.f32 %v854_v35 }
 0x1b0   :  { %v870_v43 = vsel %vm830_vm11, %v822_v61, %v1188_v39  ;;  %v924_v57 = vrot.slane %v923_v47, 2  ;;  %v911_v61 = vadd.f32 %v910_v51, %v909_v42 }
 0x1b1   :  { %v884_v45 = vmul.f32 %v1629_v63, %v870_v43 }
 0x1b2   :  { %v925_v3 = vadd.f32 %v924_v57, %v923_v47  ;;  %v912_v7 = vrot.slane %v911_v61, 1 }
 0x1b3   :  { %v928_v49 = vsel %vm620_vm1, %v884_v45, 0.0 }
 0x1b4   :  { %v929_v52 = vrot.slane %v928_v49, 4  ;;  %v926_v14 = vrot.slane %v925_v3, 1  ;;  %v913_v17 = vadd.f32 %v912_v7, %v911_v61 }
 0x1b5   :  { %v1254_v53 = vpop.eup %1253 }
 0x1b6   :  { %v930_v58 = vadd.f32 %v929_v52, %v928_v49  ;;  %v1189_v59 = vadd.f32 -1.0, %v1254_v53  ;;  %v927_v20 = vadd.f32 %v926_v14, %v925_v3 }
 0x1b8   :  { %v931_v62 = vrot.slane %v930_v58, 2  ;;  %v871_v0 = vsel %vm831_vm12, %v823_v22, %v1189_v59  ;;  %v957_v22 = vsel %vm956_vm13, %v899_v12, %v892_v18 }
 0x1b9   :  { %v885_v2 = vmul.f32 %v1629_v63, %v871_v0  ;;  %v920_v63 = vadd.f32 %v919_v10, %v918_v1  ;;  %v959_v24 = vsel %vm958_vm14, %v906_v15, %v957_v22 }
 0x1ba   :  { %v932_v13 = vadd.f32 %v931_v62, %v930_v58  ;;  %v961_v27 = vsel %vm960_vm15, %v913_v17, %v959_v24 }
 0x1bb   :  { %v935_v5 = vsel %vm620_vm1, %v885_v2, 0.0  ;;  %v963_v28 = vsel %vm962_vm2, %v920_v63, %v961_v27 }
 0x1bc   :  { %v936_v8 = vrot.slane %v935_v5, 4  ;;  %v933_v16 = vrot.slane %v932_v13, 1  ;;  %v965_v30 = vsel %vm964_vm3, %v927_v20, %v963_v28 }
 0x1be   :  { %v937_v11 = vadd.f32 %v936_v8, %v935_v5  ;;  %v934_v23 = vadd.f32 %v933_v16, %v932_v13 }
 0x1c0   :  { %v938_v19 = vrot.slane %v937_v11, 2  ;;  %v967_v26 = vsel %vm966_vm4, %v934_v23, %v965_v30 }
 0x1c2   :  { %v939_v21 = vadd.f32 %v938_v19, %v937_v11 }
 0x1c4   :  { %v940_v25 = vrot.slane %v939_v21, 1 }
 0x1c6   :  { %v941_v29 = vadd.f32 %v940_v25, %v939_v21 }
 0x1c8   :  { %v969_v31 = vsel %vm968_vm5, %v941_v29, %v967_v26 }
 0x1c9   :  { %1190 = vmatmul.msk.f32.vlgmr.msrb.gmra.mxu1 %vm620_vm1, %v969_v31 }
 0x246   :  { %v989_v33 = vpop.f32.mrf.mxu1 }
 0x247   :  { %v990_v34 = vadd.f32 %v1205_v32, %v989_v33 }
 0x249   :  { %v992_v35 = vmax.f32 %v990_v34, 0.0 }
 0x24b   :  { %1191 = vmatmul.msk.f32.vlgmr.msra.gmra.mxu2 %vm76_vm0, %v992_v35 }
 0x2ce   :  { %v1021_v37 = vpop.f32.mrf.mxu2 }
 0x2cf   :  { %v1022_v38 = vadd.f32 %v1206_v36, %v1021_v37 }
 0x2d1   :  { %1024 = vmax.xlane.f32.xlu0 %v1022_v38 }
 0x344   :  { %v1025_v39 = vpop.xlane.xlu0 %1024 }
 0x345   :  { %v1026_v40 = vsub.f32 %v1022_v38, %v1025_v39 }
 0x347   :  { %v1027_v41 = vmul.f32 1.442695, %v1026_v40 }
 0x349   :  { %1255 = vpow2.f32 %v1027_v41 }
 0x34f   :  { %v1256_v42 = vpop.eup %1255 }
 0x350   :  { %1029 = vadd.xlane.f32.xlu1 %v1256_v42 }
 0x3c3   :  { %v1030_v43 = vpop.xlane.xlu1 %1029 }
 0x3c4   :  { %1257 = vlog2.f32 %v1030_v43 }
 0x3ca   :  { %v1258_v44 = vpop.eup %1257 }
 0x3cb   :  { %v1032_v45 = vmul.f32 0.6931472, %v1258_v44 }
 0x3cd   :  { %v1033_v46 = vsub.f32 %v1026_v40, %v1032_v45 }
 0x3cf   :  { %1034 = vst [vmem:[#allocation2] sm:$0xff] %v1033_v46 }
 0x3d0   :  { %1045 = dma.vmem_to_hbm [thread:$0]  %s1041_s24, 128, %s1043_s27, [#allocation3]  }
 0x3d1   :  { %1283 = dma.done.wait [#allocation3], 128  }
 0x3d2   :  { %1284 = vsyncadd [#allocation3], 4294967168 }
 0x3d3   :  { %1050 = vsyncpa [#allocation3], 1 }

</bundles_post_ra>
